<compile_context>
chip_gen: v7x
topology: tpu7x:2x2x1
jax: 0.10.0
libtpu: 0.0.40
codegen_flags: <defaults>
</compile_context>

<pallas_src>
import functools

import jax
import jax.numpy as jnp
from jax.experimental import pallas as pl
from jax.experimental.pallas import tpu as pltpu


def _res_path_kernel(x_ref, w3_ref, b3_ref, w1_ref, b1_ref, o_ref):
    """Fused ResPath forward for one batch element.

    x_ref : (L, Cp)                 input slab, channels-last, Cp = 128-padded C
    w3_ref: (n_layers, 3*Cp, Cp)    k=3 weights, taps stacked along rows (bf16)
    b3_ref: (n_layers, 1, Cp)       k=3 bias (f32)
    w1_ref: (n_layers, Cp, Cp)      k=1 weights (bf16)
    b1_ref: (n_layers, 1, Cp)       k=1 bias (f32)
    o_ref : (L, Cp)                 output slab
    """
    L, Cp = x_ref.shape
    num_layers = w3_ref.shape[0]

    x = x_ref[...].astype(jnp.float32)                          # (L, Cp)

    row = jax.lax.broadcasted_iota(jnp.int32, (L, Cp), 0)
    first_row = row == 0
    last_row = row == (L - 1)
    zero = jnp.zeros((L, Cp), jnp.float32)

    def mm(a, w):
        return jax.lax.dot_general(
            a, w, (((1,), (0,)), ((), ())), preferred_element_type=jnp.float32
        )

    # Static unrolled loop over layers: activation ping-pongs through vregs /
    # VMEM values, never back to HBM.
    for layer in range(num_layers):
        # Zero-padded shifts along L via XLU roll + one-row mask.
        x_m1 = jnp.where(first_row, zero, pltpu.roll(x, shift=1, axis=0))      # x[l-1]
        x_p1 = jnp.where(last_row, zero, pltpu.roll(x, shift=L - 1, axis=0))   # x[l+1]

        # Fuse the three taps into one matmul with K = 3*Cp (bf16 operands).
        xcat = jnp.concatenate([x_m1, x, x_p1], axis=1).astype(jnp.bfloat16)   # (L, 3*Cp)
        xb = x.astype(jnp.bfloat16)                                            # (L, Cp)

        y3 = mm(xcat, w3_ref[layer]) + b3_ref[layer]   # (L, Cp) f32
        y1 = mm(xb, w1_ref[layer]) + b1_ref[layer]     # (L, Cp) f32

        # ReLU both branches; outer ResPath ReLU is redundant on a sum of ReLUs.
        x = jnp.maximum(y3, 0.0) + jnp.maximum(y1, 0.0)

    o_ref[...] = x.astype(o_ref.dtype)


def init_res_path_params(key, in_channels, out_channels, num_parallel_convs):
    """Synthetic init mimicking nn.Conv1d default (uniform +/- 1/sqrt(fan_in*k))."""
    params = []
    for _ in range(num_parallel_convs):
        key, k1, k2, k3, k4 = jax.random.split(key, 5)
        bound3 = 1.0 / jnp.sqrt(jnp.array(in_channels * 3, jnp.float32))
        bound1 = 1.0 / jnp.sqrt(jnp.array(in_channels * 1, jnp.float32))
        w3 = jax.random.uniform(k1, (out_channels, in_channels, 3), jnp.float32, -bound3, bound3)
        b3 = jax.random.uniform(k2, (out_channels,), jnp.float32, -bound3, bound3)
        w1 = jax.random.uniform(k3, (out_channels, in_channels, 1), jnp.float32, -bound1, bound1)
        b1 = jax.random.uniform(k4, (out_channels,), jnp.float32, -bound1, bound1)
        params.append((w3, b3, w1, b1))
        in_channels = out_channels
    return params


def pack_res_path_params(params):
    """One-time weight repack: PyTorch (Cout, Cin, K) -> lane-dense, tap-stacked,
    128-padded, bf16 weight slabs stacked over layers."""
    c_all = []
    for (w3, _, _, _) in params:
        c_all.extend([w3.shape[0], w3.shape[1]])
    cp = max(128, ((max(c_all) + 127) // 128) * 128)

    w3s, b3s, w1s, b1s = [], [], [], []
    for (w3, b3, w1, b1) in params:
        cout, cin, _ = w3.shape
        w3_t = jnp.transpose(w3, (2, 1, 0))                                   # (3, cin, cout)
        w3_p = jnp.pad(w3_t, ((0, 0), (0, cp - cin), (0, cp - cout)))         # (3, Cp, Cp)
        w3s.append(w3_p.reshape(3 * cp, cp).astype(jnp.bfloat16))             # taps along rows

        w1_t = jnp.transpose(w1[:, :, 0], (1, 0))                             # (cin, cout)
        w1s.append(jnp.pad(w1_t, ((0, cp - cin), (0, cp - cout))).astype(jnp.bfloat16))

        b3s.append(jnp.pad(b3, (0, cp - cout)).astype(jnp.float32)[None, :])  # (1, Cp)
        b1s.append(jnp.pad(b1, (0, cp - cout)).astype(jnp.float32)[None, :])

    return {
        "w3": jnp.stack(w3s),   # (n_layers, 3*Cp, Cp) bf16
        "b3": jnp.stack(b3s),   # (n_layers, 1,   Cp) f32
        "w1": jnp.stack(w1s),   # (n_layers, Cp,  Cp) bf16
        "b1": jnp.stack(b1s),   # (n_layers, 1,   Cp) f32
        "cout": params[-1][0].shape[0],
        "cp": cp,
    }


@functools.partial(jax.jit, static_argnames=("cout", "cp"))
def _res_path_jit(x_ncl, w3, b3, w1, b1, *, cout, cp):
    N, C, L = x_ncl.shape
    num_layers = w3.shape[0]

    x = jnp.transpose(x_ncl, (0, 2, 1))                 # NCL -> NLC
    x = jnp.pad(x, ((0, 0), (0, 0), (0, cp - C)))       # lane-dense channels

    out_padded = pl.pallas_call(
        _res_path_kernel,
        out_shape=jax.ShapeDtypeStruct((N, L, cp), x_ncl.dtype),
        grid=(N,),
        in_specs=[
            pl.BlockSpec((pl.Squeezed(), L, cp), lambda n: (n, 0, 0)),
            pl.BlockSpec((num_layers, 3 * cp, cp), lambda n: (0, 0, 0)),
            pl.BlockSpec((num_layers, 1, cp), lambda n: (0, 0, 0)),
            pl.BlockSpec((num_layers, cp, cp), lambda n: (0, 0, 0)),
            pl.BlockSpec((num_layers, 1, cp), lambda n: (0, 0, 0)),
        ],
        out_specs=pl.BlockSpec((pl.Squeezed(), L, cp), lambda n: (n, 0, 0)),
        compiler_params=pltpu.CompilerParams(dimension_semantics=("parallel",)),
    )(x, w3, b3, w1, b1)

    out = out_padded[:, :, :cout]
    return jnp.transpose(out, (0, 2, 1))                # NLC -> NCL


def res_path_forward(x_ncl, packed):
    """x_ncl: (N, C, L) as in PyTorch.  Returns (N, C_out, L)."""
    return _res_path_jit(
        x_ncl, packed["w3"], packed["b3"], packed["w1"], packed["b1"],
        cout=packed["cout"], cp=packed["cp"],
    )


def res_path_reference(x_ncl, params):
    """Pure-JAX reference (lax.conv, f32) for correctness check."""
    x = x_ncl
    dn = jax.lax.conv_dimension_numbers(x.shape, (1, 1, 1), ("NCH", "OIH", "NCH"))
    for (w3, b3, w1, b1) in params:
        y3 = jax.lax.conv_general_dilated(x, w3, (1,), "SAME", dimension_numbers=dn)
        y3 = y3 + b3[None, :, None]
        y1 = jax.lax.conv_general_dilated(x, w1, (1,), "SAME", dimension_numbers=dn)
        y1 = y1 + b1[None, :, None]
        x = jnp.maximum(jnp.maximum(y3, 0.0) + jnp.maximum(y1, 0.0), 0.0)
    return x


if __name__ == "__main__":
    key = jax.random.PRNGKey(0)
    k_x, k_p = jax.random.split(key)

    N, C, L = 2, 4, 16           # batch, channels, sequence length (NCL, as PyTorch)
    num_parallel_convs = 3       # in_channels == out_channels so the stack composes

    x = jax.random.normal(k_x, (N, C, L), jnp.float32)
    params = init_res_path_params(k_p, C, C, num_parallel_convs)
    packed = pack_res_path_params(params)

    out = res_path_forward(x, packed)
    out = jax.block_until_ready(out)

    ref = res_path_reference(x, params)
    assert out.shape == (N, C, L)
    # bf16 matmul operands (f32 accumulation) -> relaxed tolerance vs f32 reference.
    assert jnp.allclose(out, ref, atol=5e-2, rtol=5e-2), float(jnp.max(jnp.abs(out - ref)))

    print("KERNEL_OK")
</pallas_src>

<mosaic_0001>
module attributes {stable_mosaic.version = 11 : i64} {
  func.func @_res_path_kernel(%arg0: i32, %arg1: memref<1x16x128xf32, #tpu.memory_space<vmem>>, %arg2: memref<3x384x128xbf16, #tpu.memory_space<vmem>>, %arg3: memref<3x1x128xf32, #tpu.memory_space<vmem>>, %arg4: memref<3x128x128xbf16, #tpu.memory_space<vmem>>, %arg5: memref<3x1x128xf32, #tpu.memory_space<vmem>>, %arg6: memref<1x16x128xf32, #tpu.memory_space<vmem>>) attributes {dimension_semantics = [#tpu.dimension_semantics<parallel>], iteration_bounds = array<i64: 2>, scalar_prefetch = 0 : i64, scratch_operands = 0 : i64, tpu.core_type = #tpu.core_type<tc>, window_params = [{transform_indices = @transform_0, window_bounds = array<i64: 1, 16, 128>}, {pipeline_mode = #tpu.pipeline_mode<synchronous>, transform_indices = @transform_1, window_bounds = array<i64: 3, 384, 128>}, {pipeline_mode = #tpu.pipeline_mode<synchronous>, transform_indices = @transform_2, window_bounds = array<i64: 3, 1, 128>}, {pipeline_mode = #tpu.pipeline_mode<synchronous>, transform_indices = @transform_3, window_bounds = array<i64: 3, 128, 128>}, {pipeline_mode = #tpu.pipeline_mode<synchronous>, transform_indices = @transform_4, window_bounds = array<i64: 3, 1, 128>}, {transform_indices = @transform_5, window_bounds = array<i64: 1, 16, 128>}]} {
    %c0 = arith.constant 0 : index
    %c0_0 = arith.constant 0 : index
    %c0_1 = arith.constant 0 : index
    %0 = vector.load %arg1[%c0, %c0_0, %c0_1] : memref<1x16x128xf32, #tpu.memory_space<vmem>>, vector<1x16x128xf32>
    %1 = vector.shape_cast %0 : vector<1x16x128xf32> to vector<16x128xf32>
    %2 = tpu.iota {dimensions = array<i32: 0>} : vector<16x128xi32>
    %c0_i32 = arith.constant 0 : i32
    %3 = vector.broadcast %c0_i32 : i32 to vector<16x128xi32>
    %4 = arith.cmpi eq, %2, %3 : vector<16x128xi32>
    %c15_i32 = arith.constant 15 : i32
    %5 = vector.broadcast %c15_i32 : i32 to vector<16x128xi32>
    %6 = arith.cmpi eq, %2, %5 : vector<16x128xi32>
    %cst = arith.constant 0.000000e+00 : f32
    %7 = vector.broadcast %cst : f32 to vector<16x128xf32>
    %c1_i32 = arith.constant 1 : i32
    %8 = tpu.dynamic_rotate %1 by %c1_i32 dim 0 : vector<16x128xf32>, i32 -> vector<16x128xf32>
    %9 = arith.select %4, %7, %8 : vector<16x128xi1>, vector<16x128xf32>
    %c15_i32_2 = arith.constant 15 : i32
    %10 = tpu.dynamic_rotate %1 by %c15_i32_2 dim 0 : vector<16x128xf32>, i32 -> vector<16x128xf32>
    %11 = arith.select %6, %7, %10 : vector<16x128xi1>, vector<16x128xf32>
    %12 = tpu.concatenate %9, %1, %11 in 1 : vector<16x128xf32>, vector<16x128xf32>, vector<16x128xf32> -> vector<16x384xf32>
    %13 = arith.truncf %12 : vector<16x384xf32> to vector<16x384xbf16>
    %14 = arith.truncf %1 : vector<16x128xf32> to vector<16x128xbf16>
    %c0_3 = arith.constant 0 : index
    %c0_4 = arith.constant 0 : index
    %c0_5 = arith.constant 0 : index
    %15 = vector.load %arg2[%c0_3, %c0_4, %c0_5] : memref<3x384x128xbf16, #tpu.memory_space<vmem>>, vector<1x384x128xbf16>
    %16 = vector.shape_cast %15 : vector<1x384x128xbf16> to vector<384x128xbf16>
    %cst_6 = arith.constant dense<0.000000e+00> : vector<16x128xf32>
    %17 = tpu.matmul %13, %16, %cst_6 {dimension_numbers = #tpu.dot_dimension_numbers<[1], [0], [0], [1], [0, 0, 1, 1], [], []>} : vector<16x384xbf16>, vector<384x128xbf16>, vector<16x128xf32> -> vector<16x128xf32>
    %c0_7 = arith.constant 0 : index
    %c0_8 = arith.constant 0 : index
    %c0_9 = arith.constant 0 : index
    %18 = vector.load %arg3[%c0_7, %c0_8, %c0_9] : memref<3x1x128xf32, #tpu.memory_space<vmem>>, vector<1x1x128xf32>
    %19 = vector.shape_cast %18 : vector<1x1x128xf32> to vector<1x128xf32>
    %20 = vector.broadcast %19 : vector<1x128xf32> to vector<16x128xf32>
    %21 = arith.addf %17, %20 : vector<16x128xf32>
    %c0_10 = arith.constant 0 : index
    %c0_11 = arith.constant 0 : index
    %c0_12 = arith.constant 0 : index
    %22 = vector.load %arg4[%c0_10, %c0_11, %c0_12] : memref<3x128x128xbf16, #tpu.memory_space<vmem>>, vector<1x128x128xbf16>
    %23 = vector.shape_cast %22 : vector<1x128x128xbf16> to vector<128x128xbf16>
    %cst_13 = arith.constant dense<0.000000e+00> : vector<16x128xf32>
    %24 = tpu.matmul %14, %23, %cst_13 {dimension_numbers = #tpu.dot_dimension_numbers<[1], [0], [0], [1], [0, 0, 1, 1], [], []>} : vector<16x128xbf16>, vector<128x128xbf16>, vector<16x128xf32> -> vector<16x128xf32>
    %c0_14 = arith.constant 0 : index
    %c0_15 = arith.constant 0 : index
    %c0_16 = arith.constant 0 : index
    %25 = vector.load %arg5[%c0_14, %c0_15, %c0_16] : memref<3x1x128xf32, #tpu.memory_space<vmem>>, vector<1x1x128xf32>
    %26 = vector.shape_cast %25 : vector<1x1x128xf32> to vector<1x128xf32>
    %27 = vector.broadcast %26 : vector<1x128xf32> to vector<16x128xf32>
    %28 = arith.addf %24, %27 : vector<16x128xf32>
    %cst_17 = arith.constant 0.000000e+00 : f32
    %29 = vector.broadcast %cst_17 : f32 to vector<16x128xf32>
    %30 = arith.maximumf %21, %29 : vector<16x128xf32>
    %cst_18 = arith.constant 0.000000e+00 : f32
    %31 = vector.broadcast %cst_18 : f32 to vector<16x128xf32>
    %32 = arith.maximumf %28, %31 : vector<16x128xf32>
    %33 = arith.addf %30, %32 : vector<16x128xf32>
    %c1_i32_19 = arith.constant 1 : i32
    %34 = tpu.dynamic_rotate %33 by %c1_i32_19 dim 0 : vector<16x128xf32>, i32 -> vector<16x128xf32>
    %35 = arith.select %4, %7, %34 : vector<16x128xi1>, vector<16x128xf32>
    %c15_i32_20 = arith.constant 15 : i32
    %36 = tpu.dynamic_rotate %33 by %c15_i32_20 dim 0 : vector<16x128xf32>, i32 -> vector<16x128xf32>
    %37 = arith.select %6, %7, %36 : vector<16x128xi1>, vector<16x128xf32>
    %38 = tpu.concatenate %35, %33, %37 in 1 : vector<16x128xf32>, vector<16x128xf32>, vector<16x128xf32> -> vector<16x384xf32>
    %39 = arith.truncf %38 : vector<16x384xf32> to vector<16x384xbf16>
    %40 = arith.truncf %33 : vector<16x128xf32> to vector<16x128xbf16>
    %c1 = arith.constant 1 : index
    %c0_21 = arith.constant 0 : index
    %c0_22 = arith.constant 0 : index
    %41 = vector.load %arg2[%c1, %c0_21, %c0_22] : memref<3x384x128xbf16, #tpu.memory_space<vmem>>, vector<1x384x128xbf16>
    %42 = vector.shape_cast %41 : vector<1x384x128xbf16> to vector<384x128xbf16>
    %cst_23 = arith.constant dense<0.000000e+00> : vector<16x128xf32>
    %43 = tpu.matmul %39, %42, %cst_23 {dimension_numbers = #tpu.dot_dimension_numbers<[1], [0], [0], [1], [0, 0, 1, 1], [], []>} : vector<16x384xbf16>, vector<384x128xbf16>, vector<16x128xf32> -> vector<16x128xf32>
    %c1_24 = arith.constant 1 : index
    %c0_25 = arith.constant 0 : index
    %c0_26 = arith.constant 0 : index
    %44 = vector.load %arg3[%c1_24, %c0_25, %c0_26] : memref<3x1x128xf32, #tpu.memory_space<vmem>>, vector<1x1x128xf32>
    %45 = vector.shape_cast %44 : vector<1x1x128xf32> to vector<1x128xf32>
    %46 = vector.broadcast %45 : vector<1x128xf32> to vector<16x128xf32>
    %47 = arith.addf %43, %46 : vector<16x128xf32>
    %c1_27 = arith.constant 1 : index
    %c0_28 = arith.constant 0 : index
    %c0_29 = arith.constant 0 : index
    %48 = vector.load %arg4[%c1_27, %c0_28, %c0_29] : memref<3x128x128xbf16, #tpu.memory_space<vmem>>, vector<1x128x128xbf16>
    %49 = vector.shape_cast %48 : vector<1x128x128xbf16> to vector<128x128xbf16>
    %cst_30 = arith.constant dense<0.000000e+00> : vector<16x128xf32>
    %50 = tpu.matmul %40, %49, %cst_30 {dimension_numbers = #tpu.dot_dimension_numbers<[1], [0], [0], [1], [0, 0, 1, 1], [], []>} : vector<16x128xbf16>, vector<128x128xbf16>, vector<16x128xf32> -> vector<16x128xf32>
    %c1_31 = arith.constant 1 : index
    %c0_32 = arith.constant 0 : index
    %c0_33 = arith.constant 0 : index
    %51 = vector.load %arg5[%c1_31, %c0_32, %c0_33] : memref<3x1x128xf32, #tpu.memory_space<vmem>>, vector<1x1x128xf32>
    %52 = vector.shape_cast %51 : vector<1x1x128xf32> to vector<1x128xf32>
    %53 = vector.broadcast %52 : vector<1x128xf32> to vector<16x128xf32>
    %54 = arith.addf %50, %53 : vector<16x128xf32>
    %cst_34 = arith.constant 0.000000e+00 : f32
    %55 = vector.broadcast %cst_34 : f32 to vector<16x128xf32>
    %56 = arith.maximumf %47, %55 : vector<16x128xf32>
    %cst_35 = arith.constant 0.000000e+00 : f32
    %57 = vector.broadcast %cst_35 : f32 to vector<16x128xf32>
    %58 = arith.maximumf %54, %57 : vector<16x128xf32>
    %59 = arith.addf %56, %58 : vector<16x128xf32>
    %c1_i32_36 = arith.constant 1 : i32
    %60 = tpu.dynamic_rotate %59 by %c1_i32_36 dim 0 : vector<16x128xf32>, i32 -> vector<16x128xf32>
    %61 = arith.select %4, %7, %60 : vector<16x128xi1>, vector<16x128xf32>
    %c15_i32_37 = arith.constant 15 : i32
    %62 = tpu.dynamic_rotate %59 by %c15_i32_37 dim 0 : vector<16x128xf32>, i32 -> vector<16x128xf32>
    %63 = arith.select %6, %7, %62 : vector<16x128xi1>, vector<16x128xf32>
    %64 = tpu.concatenate %61, %59, %63 in 1 : vector<16x128xf32>, vector<16x128xf32>, vector<16x128xf32> -> vector<16x384xf32>
    %65 = arith.truncf %64 : vector<16x384xf32> to vector<16x384xbf16>
    %66 = arith.truncf %59 : vector<16x128xf32> to vector<16x128xbf16>
    %c2 = arith.constant 2 : index
    %c0_38 = arith.constant 0 : index
    %c0_39 = arith.constant 0 : index
    %67 = vector.load %arg2[%c2, %c0_38, %c0_39] : memref<3x384x128xbf16, #tpu.memory_space<vmem>>, vector<1x384x128xbf16>
    %68 = vector.shape_cast %67 : vector<1x384x128xbf16> to vector<384x128xbf16>
    %cst_40 = arith.constant dense<0.000000e+00> : vector<16x128xf32>
    %69 = tpu.matmul %65, %68, %cst_40 {dimension_numbers = #tpu.dot_dimension_numbers<[1], [0], [0], [1], [0, 0, 1, 1], [], []>} : vector<16x384xbf16>, vector<384x128xbf16>, vector<16x128xf32> -> vector<16x128xf32>
    %c2_41 = arith.constant 2 : index
    %c0_42 = arith.constant 0 : index
    %c0_43 = arith.constant 0 : index
    %70 = vector.load %arg3[%c2_41, %c0_42, %c0_43] : memref<3x1x128xf32, #tpu.memory_space<vmem>>, vector<1x1x128xf32>
    %71 = vector.shape_cast %70 : vector<1x1x128xf32> to vector<1x128xf32>
    %72 = vector.broadcast %71 : vector<1x128xf32> to vector<16x128xf32>
    %73 = arith.addf %69, %72 : vector<16x128xf32>
    %c2_44 = arith.constant 2 : index
    %c0_45 = arith.constant 0 : index
    %c0_46 = arith.constant 0 : index
    %74 = vector.load %arg4[%c2_44, %c0_45, %c0_46] : memref<3x128x128xbf16, #tpu.memory_space<vmem>>, vector<1x128x128xbf16>
    %75 = vector.shape_cast %74 : vector<1x128x128xbf16> to vector<128x128xbf16>
    %cst_47 = arith.constant dense<0.000000e+00> : vector<16x128xf32>
    %76 = tpu.matmul %66, %75, %cst_47 {dimension_numbers = #tpu.dot_dimension_numbers<[1], [0], [0], [1], [0, 0, 1, 1], [], []>} : vector<16x128xbf16>, vector<128x128xbf16>, vector<16x128xf32> -> vector<16x128xf32>
    %c2_48 = arith.constant 2 : index
    %c0_49 = arith.constant 0 : index
    %c0_50 = arith.constant 0 : index
    %77 = vector.load %arg5[%c2_48, %c0_49, %c0_50] : memref<3x1x128xf32, #tpu.memory_space<vmem>>, vector<1x1x128xf32>
    %78 = vector.shape_cast %77 : vector<1x1x128xf32> to vector<1x128xf32>
    %79 = vector.broadcast %78 : vector<1x128xf32> to vector<16x128xf32>
    %80 = arith.addf %76, %79 : vector<16x128xf32>
    %cst_51 = arith.constant 0.000000e+00 : f32
    %81 = vector.broadcast %cst_51 : f32 to vector<16x128xf32>
    %82 = arith.maximumf %73, %81 : vector<16x128xf32>
    %cst_52 = arith.constant 0.000000e+00 : f32
    %83 = vector.broadcast %cst_52 : f32 to vector<16x128xf32>
    %84 = arith.maximumf %80, %83 : vector<16x128xf32>
    %85 = arith.addf %82, %84 : vector<16x128xf32>
    %c0_53 = arith.constant 0 : index
    %c0_54 = arith.constant 0 : index
    %c0_55 = arith.constant 0 : index
    %86 = vector.load %arg6[%c0_53, %c0_54, %c0_55] : memref<1x16x128xf32, #tpu.memory_space<vmem>>, vector<1x16x128xf32>
    %87 = vector.shape_cast %86 : vector<1x16x128xf32> to vector<16x128xf32>
    %88 = vector.shape_cast %85 : vector<16x128xf32> to vector<1x16x128xf32>
    tpu.vector_store %arg6[%c0_53, %c0_54, %c0_55], %88 {strides = array<i32>} : memref<1x16x128xf32, #tpu.memory_space<vmem>>, vector<1x16x128xf32>,
    return
  }
  func.func @transform_0(%arg0: i32) -> (i32, i32, i32) {
    %c0_i32 = arith.constant 0 : i32
    %c0_i32_0 = arith.constant 0 : i32
    %c0_i32_1 = arith.constant 0 : i32
    return %arg0, %c0_i32, %c0_i32_0 : i32, i32, i32
  }
  func.func @transform_1(%arg0: i32) -> (i32, i32, i32) {
    %c0_i32 = arith.constant 0 : i32
    %c0_i32_0 = arith.constant 0 : i32
    %c0_i32_1 = arith.constant 0 : i32
    %c0_i32_2 = arith.constant 0 : i32
    return %c0_i32, %c0_i32_0, %c0_i32_1 : i32, i32, i32
  }
  func.func @transform_2(%arg0: i32) -> (i32, i32, i32) {
    %c0_i32 = arith.constant 0 : i32
    %c0_i32_0 = arith.constant 0 : i32
    %c0_i32_1 = arith.constant 0 : i32
    %c0_i32_2 = arith.constant 0 : i32
    return %c0_i32, %c0_i32_0, %c0_i32_1 : i32, i32, i32
  }
  func.func @transform_3(%arg0: i32) -> (i32, i32, i32) {
    %c0_i32 = arith.constant 0 : i32
    %c0_i32_0 = arith.constant 0 : i32
    %c0_i32_1 = arith.constant 0 : i32
    %c0_i32_2 = arith.constant 0 : i32
    return %c0_i32, %c0_i32_0, %c0_i32_1 : i32, i32, i32
  }
  func.func @transform_4(%arg0: i32) -> (i32, i32, i32) {
    %c0_i32 = arith.constant 0 : i32
    %c0_i32_0 = arith.constant 0 : i32
    %c0_i32_1 = arith.constant 0 : i32
    %c0_i32_2 = arith.constant 0 : i32
    return %c0_i32, %c0_i32_0, %c0_i32_1 : i32, i32, i32
  }
  func.func @transform_5(%arg0: i32) -> (i32, i32, i32) {
    %c0_i32 = arith.constant 0 : i32
    %c0_i32_0 = arith.constant 0 : i32
    %c0_i32_1 = arith.constant 0 : i32
    return %arg0, %c0_i32, %c0_i32_0 : i32, i32, i32
  }
}

</mosaic_0001>

<bundles_post_ra>
// kernel: _res_path_jit.1
= control target key start
LH: loop header
LB: loop body
LE: loop exit
PB: predicated region body
PF: predicated region fallthrough
CT: control target
= control target key end

     0   :  { %10 = vsyncpa [#allocation3], 0  ;;  %s2454_s0 = inlined_call_operand.vmem [shape: f32[2,16,128], index: 0, kind: input, shape index: {}]   ;;  %s2455_s1 = inlined_call_operand.hbm [shape: bf16[3,384,128], index: 1, kind: input, shape index: {}]   ;;  %s2456_s2 = inlined_call_operand.vmem [shape: f32[3,1,128], index: 2, kind: input, shape index: {}]   ;;  %s2457_s3 = inlined_call_operand.hbm [shape: bf16[3,128,128], index: 3, kind: input, shape index: {}]   ;;  %s2458_s4 = inlined_call_operand.vmem [shape: f32[3,1,128], index: 4, kind: input, shape index: {}]   ;;  %s2459_s5 = inlined_call_operand.vmem [shape: f32[2,16,128], index: 5, kind: output, shape index: {}]  }
   0x1   :  { %11 = vsyncpa [#allocation5], 0  ;;  %s2224_s18 = smov 0  }
   0x2 LB: > { %s2230_s19 = sadd.s32 4294967295, %s2185_s18   ;;  %p1598_p0 = scmp.ge.s32.totalorder %s2185_s18, 1  ;;  %s2185_s18 = sphi %s2224_s18, %s17_s18  }
   0x3   : > { %p158_p1 = scmp.lt.s32.totalorder %s2185_s18, 3  ;;  %s2187_s20 = smov [#allocation2]  }
   0x4   : > { %s170_s21 = sshll.u32 %s2187_s20, 4  ;;  %p2460_p3 = scmp.eq.s32.totalorder %s2230_s19, 0  ;;  %s171_s21 = int_to_ptr.vmem [resolvable:$true] %s170_s21 }
   0x5   : > { %p2234_p2 = pnand %p1598_p0, %p158_p1  ;;  %s2188_s23 = smov [#allocation4]  }
   0x6   : > { %s186_s24 = sshll.u32 %s2188_s23, 4  ;;  %s2115_s28 = scalar_lea.hbm %s2455_s1, 9216  ;;  %s2247_s24 = int_to_ptr.vmem [resolvable:$true] %s186_s24 }
   0x7   : > { %s2462_s22 = scalar_select %p2234_p2, 1, 0 }
   0x8   : > { %p1993_p4 = pneg %p2234_p2  ;;  %p2116_p6 = scmp.ne.s32.totalorder %s2455_s1, %s2115_s28 }
   0x9   : > { %p2122_p10 = scmp.lt.u32.totalorder %s2115_s28, %s2455_s1 }
   0xa   : > { %p2243_p5 = pnand %p2460_p3, %p1993_p4 }
   0xc   : > { %p2117_p7 = pneg %p2243_p5 }
   0xe   : > { %p2118_p8 = pnand %p2117_p7, %p2116_p6 }
  0x10   : > { %p2119_p9 = pneg %p2118_p8 }
  0x12   : > { %p2124_p11 = pnand %p2122_p10, %p2119_p9 }
  0x14   : > { %2127 = shalt.err (!%p2124_p11)
}
  0x15   : > { %s2128_s8 = scalar_lea.vmem %s171_s21, 9216  ;;  %p2136_p1 = scmp.lt.s32.totalorder %s171_s21, %s171_s21 }
  0x16   : > { %p2129_p12 = scmp.ne.s32.totalorder %s171_s21, %s2128_s8  ;;  %p2137_p4 = scmp.lt.s32.totalorder %s2128_s8, %s2128_s8 }
  0x18   : > { %p2131_p13 = pnand %p2129_p12, %p2117_p7  ;;  %p2138_p3 = por %p2137_p4, %p2136_p1 }
  0x1a   : > { %p2132_p0 = pneg %p2131_p13 }
  0x1c   : > { %p2139_p2 = pnand %p2138_p3, %p2132_p0 }
  0x1e   : > { %2142 = shalt.err (!%p2139_p2)
}
  0x1f   : > { %s2189_s9 = smov 64   ;;  %s2190_s10 = smov 4  }
  0x20   : > { %1996 = dma.hbm_to_vmem [thread:$0]  (!%p2243_p5), %s2455_s1, 9216, %s171_s21, [#allocation3], %s2189_s9, %s2189_s9, %s2190_s10  }
  0x21   : > { %s2143_s15 = scalar_lea.hbm %s2457_s3, 3072 }
  0x22   : > { %p2144_p6 = scmp.ne.s32.totalorder %s2457_s3, %s2143_s15  ;;  %p2150_p8 = scmp.lt.u32.totalorder %s2143_s15, %s2457_s3 }
  0x24   : > { %p2146_p2 = pnand %p2144_p6, %p2117_p7 }
  0x26   : > { %p2147_p3 = pneg %p2146_p2 }
  0x28   : > { %p2152_p9 = pnand %p2150_p8, %p2147_p3 }
  0x2a   : > { %2155 = shalt.err (!%p2152_p9)
}
  0x2b   : > { %s2156_s21 = scalar_lea.vmem %s2247_s24, 3072  ;;  %p2164_p13 = scmp.lt.s32.totalorder %s2247_s24, %s2247_s24 }
  0x2c   : > { %p2157_p10 = scmp.ne.s32.totalorder %s2247_s24, %s2156_s21  ;;  %p2165_p0 = scmp.lt.s32.totalorder %s2156_s21, %s2156_s21 }
  0x2e   : > { %p2159_p11 = pnand %p2157_p10, %p2117_p7  ;;  %p2166_p1 = por %p2165_p0, %p2164_p13 }
  0x30   : > { %p2160_p12 = pneg %p2159_p11 }
  0x32   : > { %p2167_p4 = pnand %p2166_p1, %p2160_p12 }
  0x34   : > { %2170 = shalt.err (!%p2167_p4)
}
  0x35   : > { %1999 = dma.hbm_to_vmem [thread:$0]  (!%p2243_p5), %s2457_s3, 3072, %s2247_s24, [#allocation5], %s2189_s9, %s2189_s9, %s2190_s10  }
  0x36   : > { %p2464_p6 = scmp.ne.s32.totalorder %s2462_s22, 0 }
  0x37   : > { %p2465_p2 = scmp.eq.s32.totalorder (!%p2464_p6), %s2230_s19, 0 }
  0x38   : > { %213 = sbr.rel (%p2464_p6) target bundleno = 868 (0x364), region = 40 }
  0x3f   : > { %2176 = dma.done.wait (%p2465_p2), [#allocation3], 9216   ;;  %p2466_p7 = pmov %p2465_p2 }
  0x40   : > { %p2467_p3 = pmov %p2465_p2 }
  0x41   : > { %2178 = vsyncadd (%p2466_p7), [#allocation3], 4294958080 }
  0x42   : > { %2180 = dma.done.wait (%p2467_p3), [#allocation5], 3072   ;;  %p2468_p8 = pmov %p2465_p2 }
  0x43   : > { %v2191_v0 = vmov 0.0   ;;  %vm2192_vm0 = vmmov 0   ;;  %v2019_v1 = vld [vmem:[#allocation2 + $0x40] sm:$0xff]   ;;  %v2021_v3 = vld [vmem:[#allocation2 + $0x48] sm:$0xff]   ;;  %v2024_v6 = vld [vmem:[#allocation2 + $0x50] sm:$0xff]   ;;  %p245_p5 = scmp.lt.s32.totalorder %s2230_s19, 1  ;;  %v258_v15 = vlaneseq }
  0x44   : > { %2182 = vsyncadd (%p2468_p8), [#allocation5], 4294964224  ;;  %1865 = vmatprep.subr.bf16.mxu1 %v2191_v0  ;;  %1881 = vmatprep.mubr.msk.bf16.mxu1 %vm2192_vm0, %v2191_v0  ;;  %v2020_v2 = vld [vmem:[#allocation2] sm:$0xff]   ;;  %v2022_v4 = vld [vmem:[#allocation2 + $0x8] sm:$0xff]   ;;  %vm2193_vm4 = vmmov 1  }
  0x45   : > { %1745 = vmatprep.subr.bf16.mxu0 %v2019_v1  ;;  %v2023_v5 = vld [vmem:[#allocation2 + $0x80] sm:$0xff]   ;;  %v2025_v7 = vld [vmem:[#allocation2 + $0x10] sm:$0xff]   ;;  %v2026_v8 = vld [vmem:[#allocation2 + $0x88] sm:$0xff]   ;;  %s2474_s19 = smov (!%p245_p5, %s2230_s19), 1  ;;  %v2318_v19 = vshrl.u32 %v258_v15, 7 }
  0x46   : > { %1746 = vmatpush3.bf16.msra.mxu0 %v2020_v2  ;;  %1866 = vmatpush3.bf16.msra.mxu1 %v2023_v5  ;;  %v2027_v9 = vld [vmem:[#allocation2 + $0x58] sm:$0xff]   ;;  %v2029_v10 = vld [vmem:[#allocation2 + $0x90] sm:$0xff]   ;;  %v2030_v12 = vld [vmem:[#allocation2 + $0x60] sm:$0xff]   ;;  %s1741_s22 = sshll.u32 %s2474_s19, 4 }
  0x47   : > { %1747 = vmatprep.subr.bf16.mxu0 %v2021_v3  ;;  %1867 = vmatprep.subr.bf16.mxu1 %v2191_v0  ;;  %v2028_v11 = vld [vmem:[#allocation2 + $0x18] sm:$0xff]   ;;  %v2031_v14 = vld [vmem:[#allocation2 + $0x20] sm:$0xff]   ;;  %v2033_v16 = vld [vmem:[#allocation2 + $0x68] sm:$0xff]   ;;  %s249_s28 = scalar_lea.vmem %s2454_s0, %s1741_s22  ;;  %vm267_vm1 = vcmp.lt.s32.totalorder %v2318_v19, 1  ;;  %vm1743_vm2 = vcmp.ne.s32.totalorder %v2318_v19, 0  ;;  %v260_v30 = vadd.s32 8, %v2318_v19  ;;  %s254_s20 = scalar_lea.vmem %s2459_s5, %s1741_s22 }
  0x48   : > { %v2032_v13 = vld [vmem:[#allocation2 + $0x98] sm:$0xff]   ;;  %v2035_v17 = vld [vmem:[#allocation2 + $0xa0] sm:$0xff]   ;;  %v2034_v18 = vld [vmem:[#allocation2 + $0x28] sm:$0xff]   ;;  %vm274_vm3 = vcmp.lt.s32.totalorder %v2318_v19, 7 }
  0x49   : > { %v2036_v20 = vld [vmem:[#allocation2 + $0x70] sm:$0xff]   ;;  %v2038_v22 = vld [vmem:[#allocation2 + $0xa8] sm:$0xff]   ;;  %v256_v23 = vld [vmem:[%s249_s28] sm:$0xff]  ;;  %vm1744_vm6 = vcmp.ne.s32.totalorder %v260_v30, 15 }
  0x4a   : > { %1748 = vmatpush3.bf16.msra.mxu0 %v2022_v4  ;;  %1868 = vmatpush3.bf16.msra.mxu1 %v2026_v8  ;;  %v2037_v21 = vld [vmem:[#allocation2 + $0x30] sm:$0xff]   ;;  %v257_v24 = vld [vmem:[%s249_s28 + $0x8] sm:$0xff]  ;;  %v2039_v25 = vld [vmem:[#allocation2 + $0x78] sm:$0xff]   ;;  %v265_v26 = vrot.slane %v256_v23, 7  ;;  %v272_v31 = vrot.slane %v256_v23, 1 }
  0x4b   : > { %1749 = vmatprep.subr.bf16.mxu0 %v2024_v6  ;;  %1869 = vmatprep.subr.bf16.mxu1 %v2191_v0  ;;  %v266_v27 = vrot.slane %v257_v24, 7  ;;  %v2041_v28 = vld [vmem:[#allocation2 + $0xb0] sm:$0xff]   ;;  %v280_v29 = vpack.c.bf16 %v257_v24, %v256_v23  ;;  %v273_v32 = vrot.slane %v257_v24, 1  ;;  %v2040_v33 = vld [vmem:[#allocation2 + $0x38] sm:$0xff]   ;;  %vm2337_vm5 = vmpackc.low %vm2193_vm4, %vm1743_vm2 }
  0x4c   : > { %v2043_v38 = vld [vmem:[#allocation2 + $0xb8] sm:$0xff]   ;;  %v2042_v41 = vld [vmem:[#allocation4] sm:$0xff]   ;;  %vm2347_vm7 = vmpackc.low %vm1744_vm6, %vm2193_vm4 }
  0x4d   : > { %v268_v34 = vsel %vm267_vm1, %v265_v26, %v266_v27  ;;  %v269_v35 = vsel %vm267_vm1, %v266_v27, %v265_v26  ;;  %513 = vmatprep.mubr.bf16.mxu0 %v280_v29  ;;  %v275_v39 = vsel %vm274_vm3, %v272_v31, %v273_v32  ;;  %v276_v40 = vsel %vm274_vm3, %v273_v32, %v272_v31  ;;  %v2044_v44 = vld [vmem:[#allocation4 + $0x8] sm:$0xff]   ;;  %v2045_v45 = vld [vmem:[#allocation4 + $0x10] sm:$0xff]   ;;  %v2046_v46 = vld [vmem:[#allocation4 + $0x18] sm:$0xff]  }
  0x4e   : > { %1750 = vmatpush3.bf16.msra.mxu0 %v2025_v7  ;;  %1870 = vmatpush3.bf16.msra.mxu1 %v2029_v10  ;;  %v1636_v37 = vpack.c.bf16 %v268_v34, %v269_v35  ;;  %v1640_v43 = vpack.c.bf16 %v276_v40, %v275_v39  ;;  %v2047_v47 = vld [vmem:[#allocation4 + $0x20] sm:$0xff]   ;;  %v2048_v48 = vld [vmem:[#allocation4 + $0x28] sm:$0xff]   ;;  %v2049_v49 = vld [vmem:[#allocation4 + $0x30] sm:$0xff]  }
  0x4f   : > { %1751 = vmatprep.subr.bf16.mxu0 %v2027_v9  ;;  %1871 = vmatprep.subr.bf16.mxu1 %v2191_v0  ;;  %v2050_v50 = vld [vmem:[#allocation4 + $0x38] sm:$0xff]   ;;  %v2051_v51 = vld [vmem:[#allocation2 + $0x100] sm:$0xff]   ;;  %v2054_v54 = vld [vmem:[#allocation2 + $0x108] sm:$0xff]  }
  0x50   : > { %v2052_v52 = vld [vmem:[#allocation2 + $0xc0] sm:$0xff]   ;;  %v2056_v55 = vld [vmem:[#allocation2 + $0x148] sm:$0xff]   ;;  %v2057_v57 = vld [vmem:[#allocation2 + $0x110] sm:$0xff]  }
  0x51   : > { %v2053_v53 = vld [vmem:[#allocation2 + $0x140] sm:$0xff]   ;;  %v2055_v56 = vld [vmem:[#allocation2 + $0xc8] sm:$0xff]   ;;  %v2059_v58 = vld [vmem:[#allocation2 + $0x150] sm:$0xff]  }
  0x52   : > { %1752 = vmatpush3.bf16.msra.mxu0 %v2028_v11  ;;  %1872 = vmatpush3.bf16.msra.mxu1 %v2032_v13  ;;  %v2058_v59 = vld [vmem:[#allocation2 + $0xd0] sm:$0xff]   ;;  %v2060_v60 = vld [vmem:[#allocation2 + $0x118] sm:$0xff]   ;;  %v2063_v63 = vld [vmem:[#allocation2 + $0x120] sm:$0xff]  }
  0x53   : > { %1753 = vmatprep.subr.bf16.mxu0 %v2030_v12  ;;  %1873 = vmatprep.subr.bf16.mxu1 %v2191_v0  ;;  %v2062_v61 = vld [vmem:[#allocation2 + $0x158] sm:$0xff]   ;;  %v2065_v1 = vld [vmem:[#allocation2 + $0x160] sm:$0xff]   ;;  %v2066_v3 = vld [vmem:[#allocation2 + $0x128] sm:$0xff]  }
  0x54   : > { %v2061_v62 = vld [vmem:[#allocation2 + $0xd8] sm:$0xff]   ;;  %v2064_v2 = vld [vmem:[#allocation2 + $0xe0] sm:$0xff]   ;;  %v2067_v4 = vld [vmem:[#allocation2 + $0xe8] sm:$0xff]  }
  0x55   : > { %v2068_v5 = vld [vmem:[#allocation2 + $0x168] sm:$0xff]   ;;  %v2069_v6 = vld [vmem:[#allocation2 + $0x130] sm:$0xff]   ;;  %v2072_v9 = vld [vmem:[#allocation2 + $0x138] sm:$0xff]  }
  0x56   : > { %1754 = vmatpush3.bf16.msra.mxu0 %v2031_v14  ;;  %1874 = vmatpush3.bf16.msra.mxu1 %v2035_v17  ;;  %v2070_v7 = vld [vmem:[#allocation2 + $0xf0] sm:$0xff]   ;;  %v2073_v10 = vld [vmem:[#allocation2 + $0xf8] sm:$0xff]   ;;  %v1609_v14 = vld [vmem:[%s2456_s2] ss:$0 sm:$0xff] }
  0x57   : > { %1755 = vmatprep.subr.bf16.mxu0 %v2033_v16  ;;  %1875 = vmatprep.subr.bf16.mxu1 %v2191_v0  ;;  %v2071_v8 = vld [vmem:[#allocation2 + $0x170] sm:$0xff]   ;;  %v2074_v11 = vld [vmem:[#allocation2 + $0x178] sm:$0xff]   ;;  %v2111_v36 = vld [vmem:[#allocation4 + $0xa0] sm:$0xff]  }
  0x58   : > { %v2109_v19 = vld [vmem:[#allocation4 + $0x90] sm:$0xff]   ;;  %v2112_v42 = vld [vmem:[#allocation4 + $0xa8] sm:$0xff]  }
  0x5a   : > { %1756 = vmatpush3.bf16.msra.mxu0 %v2034_v18  ;;  %1876 = vmatpush3.bf16.msra.mxu1 %v2038_v22 }
  0x5b   : > { %1757 = vmatprep.subr.bf16.mxu0 %v2036_v20  ;;  %1877 = vmatprep.subr.bf16.mxu1 %v2191_v0 }
  0x5e   : > { %1758 = vmatpush3.bf16.msra.mxu0 %v2037_v21  ;;  %1878 = vmatpush3.bf16.msra.mxu1 %v2041_v28  ;;  %v1642_v28 = vld [vmem:[%s2458_s4] ss:$0 sm:$0xff] }
  0x5f   : > { %1759 = vmatprep.subr.bf16.mxu0 %v2039_v25  ;;  %1879 = vmatprep.subr.bf16.mxu1 %v2191_v0 }
  0x62   : > { %1760 = vmatpush3.bf16.msra.mxu0 %v2040_v33  ;;  %1880 = vmatpush3.bf16.msra.mxu1 %v2043_v38 }
  0x63   : > { %1885 = vmatprep.subr.bf16.mxu0 %v2191_v0  ;;  %1785 = vmatprep.subr.bf16.mxu1 %v2051_v51 }
  0x65   : > { %1637 = vmatmul.mubr.msk.bf16.vlgmr.msra.gmra.mrb[0].mxu0 %vm2337_vm5, %v1636_v37  ;;  %1882 = vmatmul.mubr.msk.bf16.vlgmr.msra.gmra.mrb[0].mxu1 %vm2347_vm7, %v1640_v43 }
  0x66   : > { %1886 = vmatpush3.bf16.msra.mxu0 %v2042_v41  ;;  %1901 = vmatprep.mubr.msk.bf16.mxu0 %vm2192_vm0, %v2191_v0 }
  0x67   : > { %1887 = vmatprep.subr.bf16.mxu0 %v2191_v0  ;;  %1786 = vmatpush3.bf16.msra.mxu1 %v2052_v52  ;;  %v2075_v52 = vld [vmem:[#allocation4 + $0x40] sm:$0xff]  }
  0x68   : > { %1787 = vmatprep.subr.bf16.mxu1 %v2054_v54 }
  0x6a   : > { %1888 = vmatpush3.bf16.msra.mxu0 %v2044_v44 }
  0x6b   : > { %1889 = vmatprep.subr.bf16.mxu0 %v2191_v0  ;;  %1788 = vmatpush3.bf16.msra.mxu1 %v2055_v56  ;;  %v2077_v56 = vld [vmem:[#allocation4 + $0x50] sm:$0xff]  }
  0x6c   : > { %1789 = vmatprep.subr.bf16.mxu1 %v2057_v57  ;;  %v2078_v57 = vld [vmem:[#allocation4 + $0x58] sm:$0xff]  }
  0x6e   : > { %1890 = vmatpush3.bf16.msra.mxu0 %v2045_v45 }
  0x6f   : > { %1891 = vmatprep.subr.bf16.mxu0 %v2191_v0  ;;  %1790 = vmatpush3.bf16.msra.mxu1 %v2058_v59  ;;  %v2080_v59 = vld [vmem:[#allocation4 + $0x68] sm:$0xff]  }
  0x70   : > { %1791 = vmatprep.subr.bf16.mxu1 %v2060_v60  ;;  %v2081_v60 = vld [vmem:[#allocation4 + $0x70] sm:$0xff]  }
  0x72   : > { %1892 = vmatpush3.bf16.msra.mxu0 %v2046_v46 }
  0x73   : > { %1893 = vmatprep.subr.bf16.mxu0 %v2191_v0  ;;  %1792 = vmatpush3.bf16.msra.mxu1 %v2061_v62  ;;  %v2083_v62 = vld [vmem:[#allocation2 + $0x1c0] sm:$0xff]  }
  0x74   : > { %1793 = vmatprep.subr.bf16.mxu1 %v2063_v63  ;;  %v2084_v63 = vld [vmem:[#allocation2 + $0x180] sm:$0xff]  }
  0x76   : > { %1894 = vmatpush3.bf16.msra.mxu0 %v2047_v47 }
  0x77   : > { %1895 = vmatprep.subr.bf16.mxu0 %v2191_v0  ;;  %1794 = vmatpush3.bf16.msra.mxu1 %v2064_v2  ;;  %v2086_v2 = vld [vmem:[#allocation2 + $0x1c8] sm:$0xff]  }
  0x78   : > { %1795 = vmatprep.subr.bf16.mxu1 %v2066_v3  ;;  %v2088_v3 = vld [vmem:[#allocation2 + $0x208] sm:$0xff]  }
  0x7a   : > { %1896 = vmatpush3.bf16.msra.mxu0 %v2048_v48 }
  0x7b   : > { %1897 = vmatprep.subr.bf16.mxu0 %v2191_v0  ;;  %1796 = vmatpush3.bf16.msra.mxu1 %v2067_v4  ;;  %v2087_v4 = vld [vmem:[#allocation2 + $0x188] sm:$0xff]  }
  0x7c   : > { %1797 = vmatprep.subr.bf16.mxu1 %v2069_v6  ;;  %v2091_v6 = vld [vmem:[#allocation2 + $0x210] sm:$0xff]  }
  0x7e   : > { %1898 = vmatpush3.bf16.msra.mxu0 %v2049_v49 }
  0x7f   : > { %1899 = vmatprep.subr.bf16.mxu0 %v2191_v0  ;;  %1798 = vmatpush3.bf16.msra.mxu1 %v2070_v7  ;;  %v2090_v7 = vld [vmem:[#allocation2 + $0x190] sm:$0xff]  }
  0x80   : > { %1799 = vmatprep.subr.bf16.mxu1 %v2072_v9  ;;  %v2094_v9 = vld [vmem:[#allocation2 + $0x218] sm:$0xff]  }
  0x82   : > { %1900 = vmatpush3.bf16.msra.mxu0 %v2050_v50 }
  0x83   : > { %1905 = vmatprep.subr.bf16.mxu0 %v2191_v0  ;;  %1800 = vmatpush3.bf16.msra.mxu1 %v2073_v10  ;;  %v2093_v10 = vld [vmem:[#allocation2 + $0x198] sm:$0xff]  }
  0x84   : > { %1925 = vmatprep.subr.bf16.mxu1 %v2191_v0 }
  0x85   : > { %1902 = vmatmul.mubr.bf16.vlgmr.msra.gmra.mrb[4].mxu0 %v280_v29 }
  0x86   : > { %1921 = vmatprep.mubr.msk.bf16.mxu0 %vm2192_vm0, %v2191_v0  ;;  %1906 = vmatpush3.bf16.msra.mxu0 %v2053_v53 }
  0x87   : > { %1907 = vmatprep.subr.bf16.mxu0 %v2191_v0 }
  0x8a   : > { %1908 = vmatpush3.bf16.msra.mxu0 %v2056_v55  ;;  %v2076_v55 = vld [vmem:[#allocation4 + $0x48] sm:$0xff]  }
  0x8b   : > { %1909 = vmatprep.subr.bf16.mxu0 %v2191_v0 }
  0x8e   : > { %1910 = vmatpush3.bf16.msra.mxu0 %v2059_v58  ;;  %v2079_v58 = vld [vmem:[#allocation4 + $0x60] sm:$0xff]  }
  0x8f   : > { %1911 = vmatprep.subr.bf16.mxu0 %v2191_v0 }
  0x92   : > { %1912 = vmatpush3.bf16.msra.mxu0 %v2062_v61  ;;  %v2082_v61 = vld [vmem:[#allocation4 + $0x78] sm:$0xff]  }
  0x93   : > { %1913 = vmatprep.subr.bf16.mxu0 %v2191_v0 }
  0x96   : > { %1914 = vmatpush3.bf16.msra.mxu0 %v2065_v1  ;;  %v2085_v1 = vld [vmem:[#allocation2 + $0x200] sm:$0xff]  }
  0x97   : > { %1915 = vmatprep.subr.bf16.mxu0 %v2191_v0 }
  0x9a   : > { %1916 = vmatpush3.bf16.msra.mxu0 %v2068_v5  ;;  %v2089_v5 = vld [vmem:[#allocation2 + $0x1d0] sm:$0xff]  }
  0x9b   : > { %1917 = vmatprep.subr.bf16.mxu0 %v2191_v0 }
  0x9e   : > { %1918 = vmatpush3.bf16.msra.mxu0 %v2071_v8  ;;  %v2092_v8 = vld [vmem:[#allocation2 + $0x1d8] sm:$0xff]  }
  0x9f   : > { %1919 = vmatprep.subr.bf16.mxu0 %v2191_v0 }
  0xa2   : > { %1920 = vmatpush3.bf16.msra.mxu0 %v2074_v11  ;;  %v2095_v11 = vld [vmem:[#allocation2 + $0x1e0] sm:$0xff]  }
  0xa3   : > { %1825 = vmatprep.subr.bf16.mxu0 %v2083_v62 }
 0x138   : > { %v1761_v12 = vpop.f32.mrb[0].mxu0  ;;  %v556_v18 = vpop.f32.mrb[0].mxu1 }
 0x139   : > { %v1762_v13 = vpop.f32.mrb[1].mxu0  ;;  %v1883_v22 = vpop.f32.mrb[1].mxu1 }
 0x13a   : > { %v1763_v15 = vadd.f32 %v1762_v13, %v1761_v12  ;;  %v1764_v16 = vpop.f32.mrb[2].mxu0  ;;  %v559_v23 = vpop.f32.mrb[2].mxu1  ;;  %v2097_v12 = vld [vmem:[#allocation2 + $0x220] sm:$0xff]   ;;  %v2105_v22 = vld [vmem:[#allocation2 + $0x1b8] sm:$0xff]  }
 0x13b   : > { %v1765_v17 = vpop.f32.mrb[3].mxu0  ;;  %v1884_v26 = vpop.f32.mrb[3].mxu1  ;;  %v2096_v13 = vld [vmem:[#allocation2 + $0x1a0] sm:$0xff]  }
 0x13c   : > { %v1766_v20 = vadd.f32 %v1765_v17, %v1764_v16  ;;  %v516_v21 = vadd.f32 %v1763_v15, %v1609_v14  ;;  %v2099_v15 = vld [vmem:[#allocation2 + $0x1a8] sm:$0xff]   ;;  %v2101_v17 = vld [vmem:[#allocation2 + $0x1f0] sm:$0xff]   ;;  %v1652_v26 = vld [vmem:[%s2456_s2 + $0x1] ss:$0 sm:$0xff] }
 0x13d   : > { %v2100_v16 = vld [vmem:[#allocation2 + $0x228] sm:$0xff]  }
 0x13e   : > { %v557_v24 = vadd.f32 %v556_v18, %v516_v21  ;;  %v519_v25 = vadd.f32 %v1766_v20, %v1609_v14  ;;  %v2098_v14 = vld [vmem:[#allocation2 + $0x1e8] sm:$0xff]   ;;  %v2102_v18 = vld [vmem:[#allocation2 + $0x1b0] sm:$0xff]   ;;  %v2104_v21 = vld [vmem:[#allocation2 + $0x1f8] sm:$0xff]  }
 0x13f   : > { %v2103_v20 = vld [vmem:[#allocation2 + $0x230] sm:$0xff]  }
 0x140   : > { %v560_v27 = vadd.f32 %v559_v23, %v519_v25  ;;  %v675_v33 = vmax.f32 %v557_v24, 0.0  ;;  %v2106_v23 = vld [vmem:[#allocation2 + $0x238] sm:$0xff]  }
 0x142   : > { %v676_v38 = vmax.f32 %v560_v27, 0.0 }
 0x158   : > { %v668_v29 = vpop.f32.mrb[4].mxu0 }
 0x159   : > { %v669_v30 = vadd.f32 %v1642_v28, %v668_v29  ;;  %v1903_v31 = vpop.f32.mrb[5].mxu0 }
 0x15a   : > { %v671_v32 = vpop.f32.mrb[6].mxu0 }
 0x15b   : > { %v677_v34 = vmax.f32 %v669_v30, 0.0  ;;  %v672_v35 = vadd.f32 %v1642_v28, %v671_v32  ;;  %v1904_v37 = vpop.f32.mrb[7].mxu0 }
 0x15d   : > { %v679_v39 = vadd.f32 %v677_v34, %v675_v33  ;;  %v678_v40 = vmax.f32 %v672_v35, 0.0 }
 0x15f   : > { %v680_v41 = vadd.f32 %v678_v40, %v676_v38  ;;  %v681_v43 = vrot.slane %v679_v39, 7  ;;  %v687_v44 = vrot.slane %v679_v39, 1  ;;  %v1686_v40 = vld [vmem:[%s2458_s4 + $0x1] ss:$0 sm:$0xff] }
 0x161   : > { %v682_v45 = vrot.slane %v680_v41, 7  ;;  %v688_v46 = vrot.slane %v680_v41, 1  ;;  %v694_v47 = vpack.c.bf16 %v680_v41, %v679_v39 }
 0x163   : > { %v683_v48 = vsel %vm267_vm1, %v681_v43, %v682_v45  ;;  %v684_v49 = vsel %vm267_vm1, %v682_v45, %v681_v43  ;;  %v689_v50 = vsel %vm274_vm3, %v687_v44, %v688_v46  ;;  %v690_v51 = vsel %vm274_vm3, %v688_v46, %v687_v44  ;;  %929 = vmatprep.mubr.bf16.mxu1 %v694_v47 }
 0x164   : > { %v1679_v53 = vpack.c.bf16 %v683_v48, %v684_v49  ;;  %v1683_v54 = vpack.c.bf16 %v690_v51, %v689_v50 }
 0x166   : > { %1680 = vmatmul.mubr.msk.bf16.vlgmr.msra.gmra.mrb[4].mxu1 %vm2337_vm5, %v1679_v53  ;;  %1922 = vmatmul.mubr.msk.bf16.vlgmr.msra.gmra.mrb[8].mxu0 %vm2347_vm7, %v1683_v54 }
 0x167   : > { %1926 = vmatpush3.bf16.msra.mxu1 %v2075_v52  ;;  %1941 = vmatprep.mubr.msk.bf16.mxu1 %vm2192_vm0, %v2191_v0 }
 0x168   : > { %1927 = vmatprep.subr.bf16.mxu1 %v2191_v0  ;;  %1826 = vmatpush3.bf16.msra.mxu0 %v2084_v63  ;;  %v2107_v63 = vld [vmem:[#allocation4 + $0x80] sm:$0xff]  }
 0x169   : > { %1827 = vmatprep.subr.bf16.mxu0 %v2086_v2 }
 0x16b   : > { %1928 = vmatpush3.bf16.msra.mxu1 %v2076_v55 }
 0x16c   : > { %1929 = vmatprep.subr.bf16.mxu1 %v2191_v0  ;;  %1828 = vmatpush3.bf16.msra.mxu0 %v2087_v4  ;;  %v2110_v4 = vld [vmem:[#allocation4 + $0x98] sm:$0xff]  }
 0x16d   : > { %1829 = vmatprep.subr.bf16.mxu0 %v2089_v5  ;;  %v2113_v5 = vld [vmem:[#allocation4 + $0xb0] sm:$0xff]  }
 0x16f   : > { %1930 = vmatpush3.bf16.msra.mxu1 %v2077_v56 }
 0x170   : > { %1931 = vmatprep.subr.bf16.mxu1 %v2191_v0  ;;  %1830 = vmatpush3.bf16.msra.mxu0 %v2090_v7 }
 0x171   : > { %1831 = vmatprep.subr.bf16.mxu0 %v2092_v8 }
 0x173   : > { %1932 = vmatpush3.bf16.msra.mxu1 %v2078_v57 }
 0x174   : > { %1933 = vmatprep.subr.bf16.mxu1 %v2191_v0  ;;  %1832 = vmatpush3.bf16.msra.mxu0 %v2093_v10 }
 0x175   : > { %1833 = vmatprep.subr.bf16.mxu0 %v2095_v11 }
 0x177   : > { %1934 = vmatpush3.bf16.msra.mxu1 %v2079_v58 }
 0x178   : > { %1935 = vmatprep.subr.bf16.mxu1 %v2191_v0  ;;  %1834 = vmatpush3.bf16.msra.mxu0 %v2096_v13 }
 0x179   : > { %1835 = vmatprep.subr.bf16.mxu0 %v2098_v14 }
 0x17b   : > { %1936 = vmatpush3.bf16.msra.mxu1 %v2080_v59 }
 0x17c   : > { %1937 = vmatprep.subr.bf16.mxu1 %v2191_v0  ;;  %1836 = vmatpush3.bf16.msra.mxu0 %v2099_v15 }
 0x17d   : > { %1837 = vmatprep.subr.bf16.mxu0 %v2101_v17 }
 0x17f   : > { %1938 = vmatpush3.bf16.msra.mxu1 %v2081_v60 }
 0x180   : > { %1939 = vmatprep.subr.bf16.mxu1 %v2191_v0  ;;  %1838 = vmatpush3.bf16.msra.mxu0 %v2102_v18 }
 0x181   : > { %1839 = vmatprep.subr.bf16.mxu0 %v2104_v21 }
 0x183   : > { %1940 = vmatpush3.bf16.msra.mxu1 %v2082_v61 }
 0x184   : > { %1945 = vmatprep.subr.bf16.mxu1 %v2191_v0  ;;  %1840 = vmatpush3.bf16.msra.mxu0 %v2105_v22  ;;  %v1730_v22 = vld [vmem:[%s2458_s4 + $0x2] ss:$0 sm:$0xff] }
 0x185   : > { %1965 = vmatprep.subr.bf16.mxu0 %v2191_v0 }
 0x186   : > { %1942 = vmatmul.mubr.bf16.vlgmr.msra.gmra.mrb[8].mxu1 %v694_v47 }
 0x187   : > { %1961 = vmatprep.mubr.msk.bf16.mxu1 %vm2192_vm0, %v2191_v0  ;;  %1946 = vmatpush3.bf16.msra.mxu1 %v2085_v1 }
 0x188   : > { %1947 = vmatprep.subr.bf16.mxu1 %v2191_v0 }
 0x18b   : > { %1948 = vmatpush3.bf16.msra.mxu1 %v2088_v3  ;;  %v2108_v3 = vld [vmem:[#allocation4 + $0x88] sm:$0xff]  }
 0x18c   : > { %1949 = vmatprep.subr.bf16.mxu1 %v2191_v0 }
 0x18f   : > { %1950 = vmatpush3.bf16.msra.mxu1 %v2091_v6  ;;  %v2114_v6 = vld [vmem:[#allocation4 + $0xb8] sm:$0xff]  }
 0x190   : > { %1951 = vmatprep.subr.bf16.mxu1 %v2191_v0 }
 0x193   : > { %1952 = vmatpush3.bf16.msra.mxu1 %v2094_v9  ;;  %v1696_v9 = vld [vmem:[%s2456_s2 + $0x2] ss:$0 sm:$0xff] }
 0x194   : > { %1953 = vmatprep.subr.bf16.mxu1 %v2191_v0 }
 0x197   : > { %1954 = vmatpush3.bf16.msra.mxu1 %v2097_v12 }
 0x198   : > { %1955 = vmatprep.subr.bf16.mxu1 %v2191_v0 }
 0x19b   : > { %1956 = vmatpush3.bf16.msra.mxu1 %v2100_v16 }
 0x19c   : > { %1957 = vmatprep.subr.bf16.mxu1 %v2191_v0 }
 0x19f   : > { %1958 = vmatpush3.bf16.msra.mxu1 %v2103_v20 }
 0x1a0   : > { %1959 = vmatprep.subr.bf16.mxu1 %v2191_v0 }
 0x1a3   : > { %1960 = vmatpush3.bf16.msra.mxu1 %v2106_v23 }
 0x239   : > { %v1801_v24 = vpop.f32.mrb[4].mxu1  ;;  %v972_v25 = vpop.f32.mrb[8].mxu0 }
 0x23a   : > { %v1802_v27 = vpop.f32.mrb[5].mxu1  ;;  %v1923_v28 = vpop.f32.mrb[9].mxu0 }
 0x23b   : > { %v1803_v29 = vadd.f32 %v1802_v27, %v1801_v24  ;;  %v1804_v30 = vpop.f32.mrb[6].mxu1  ;;  %v975_v31 = vpop.f32.mrb[10].mxu0 }
 0x23c   : > { %v1805_v32 = vpop.f32.mrb[7].mxu1  ;;  %v1924_v33 = vpop.f32.mrb[11].mxu0 }
 0x23d   : > { %v932_v34 = vadd.f32 %v1803_v29, %v1652_v26  ;;  %v1806_v35 = vadd.f32 %v1805_v32, %v1804_v30 }
 0x23f   : > { %v973_v37 = vadd.f32 %v972_v25, %v932_v34  ;;  %v935_v38 = vadd.f32 %v1806_v35, %v1652_v26 }
 0x241   : > { %v976_v39 = vadd.f32 %v975_v31, %v935_v38  ;;  %v1093_v46 = vmax.f32 %v973_v37, 0.0 }
 0x243   : > { %v1094_v51 = vmax.f32 %v976_v39, 0.0 }
 0x259   : > { %v1086_v41 = vpop.f32.mrb[8].mxu1 }
 0x25a   : > { %v1087_v43 = vadd.f32 %v1686_v40, %v1086_v41  ;;  %v1943_v44 = vpop.f32.mrb[9].mxu1 }
 0x25b   : > { %v1089_v45 = vpop.f32.mrb[10].mxu1 }
 0x25c   : > { %v1095_v47 = vmax.f32 %v1087_v43, 0.0  ;;  %v1090_v48 = vadd.f32 %v1686_v40, %v1089_v45  ;;  %v1944_v49 = vpop.f32.mrb[11].mxu1 }
 0x25e   : > { %v1097_v50 = vadd.f32 %v1095_v47, %v1093_v46  ;;  %v1096_v52 = vmax.f32 %v1090_v48, 0.0 }
 0x260   : > { %v1098_v53 = vadd.f32 %v1096_v52, %v1094_v51  ;;  %v1099_v54 = vrot.slane %v1097_v50, 7  ;;  %v1105_v55 = vrot.slane %v1097_v50, 1 }
 0x262   : > { %v1100_v56 = vrot.slane %v1098_v53, 7  ;;  %v1106_v57 = vrot.slane %v1098_v53, 1  ;;  %v1112_v58 = vpack.c.bf16 %v1098_v53, %v1097_v50 }
 0x264   : > { %v1101_v59 = vsel %vm267_vm1, %v1099_v54, %v1100_v56  ;;  %v1102_v60 = vsel %vm267_vm1, %v1100_v56, %v1099_v54  ;;  %v1107_v61 = vsel %vm274_vm3, %v1105_v55, %v1106_v57  ;;  %v1108_v62 = vsel %vm274_vm3, %v1106_v57, %v1105_v55  ;;  %1347 = vmatprep.mubr.bf16.mxu0 %v1112_v58 }
 0x265   : > { %v1723_v1 = vpack.c.bf16 %v1101_v59, %v1102_v60  ;;  %v1727_v2 = vpack.c.bf16 %v1108_v62, %v1107_v61 }
 0x267   : > { %1724 = vmatmul.mubr.msk.bf16.vlgmr.msra.gmra.mrb[12].mxu0 %vm2337_vm5, %v1723_v1  ;;  %1962 = vmatmul.mubr.msk.bf16.vlgmr.msra.gmra.mrb[12].mxu1 %vm2347_vm7, %v1727_v2 }
 0x268   : > { %1966 = vmatpush3.bf16.msra.mxu0 %v2107_v63  ;;  %1981 = vmatprep.mubr.msk.bf16.mxu0 %vm2192_vm0, %v2191_v0 }
 0x269   : > { %1967 = vmatprep.subr.bf16.mxu0 %v2191_v0 }
 0x26c   : > { %1968 = vmatpush3.bf16.msra.mxu0 %v2108_v3 }
 0x26d   : > { %1969 = vmatprep.subr.bf16.mxu0 %v2191_v0 }
 0x270   : > { %1970 = vmatpush3.bf16.msra.mxu0 %v2109_v19 }
 0x271   : > { %1971 = vmatprep.subr.bf16.mxu0 %v2191_v0 }
 0x274   : > { %1972 = vmatpush3.bf16.msra.mxu0 %v2110_v4 }
 0x275   : > { %1973 = vmatprep.subr.bf16.mxu0 %v2191_v0 }
 0x278   : > { %1974 = vmatpush3.bf16.msra.mxu0 %v2111_v36 }
 0x279   : > { %1975 = vmatprep.subr.bf16.mxu0 %v2191_v0 }
 0x27c   : > { %1976 = vmatpush3.bf16.msra.mxu0 %v2112_v42 }
 0x27d   : > { %1977 = vmatprep.subr.bf16.mxu0 %v2191_v0 }
 0x280   : > { %1978 = vmatpush3.bf16.msra.mxu0 %v2113_v5 }
 0x281   : > { %1979 = vmatprep.subr.bf16.mxu0 %v2191_v0 }
 0x284   : > { %1980 = vmatpush3.bf16.msra.mxu0 %v2114_v6 }
 0x287   : > { %1982 = vmatmul.mubr.bf16.vlgmr.msra.gmra.mrb[16].mxu0 %v1112_v58 }
 0x33a   : > { %v1841_v7 = vpop.f32.mrb[12].mxu0  ;;  %v1390_v8 = vpop.f32.mrb[12].mxu1 }
 0x33b   : > { %v1842_v10 = vpop.f32.mrb[13].mxu0  ;;  %v1963_v11 = vpop.f32.mrb[13].mxu1 }
 0x33c   : > { %v1843_v12 = vadd.f32 %v1842_v10, %v1841_v7  ;;  %v1844_v13 = vpop.f32.mrb[14].mxu0  ;;  %v1393_v14 = vpop.f32.mrb[14].mxu1 }
 0x33d   : > { %v1845_v15 = vpop.f32.mrb[15].mxu0  ;;  %v1964_v16 = vpop.f32.mrb[15].mxu1 }
 0x33e   : > { %v1350_v17 = vadd.f32 %v1843_v12, %v1696_v9  ;;  %v1846_v18 = vadd.f32 %v1845_v15, %v1844_v13 }
 0x340   : > { %v1391_v20 = vadd.f32 %v1390_v8, %v1350_v17  ;;  %v1353_v0 = vadd.f32 %v1846_v18, %v1696_v9 }
 0x342   : > { %v1394_v21 = vadd.f32 %v1393_v14, %v1353_v0  ;;  %v1511_v27 = vmax.f32 %v1391_v20, 0.0 }
 0x344   : > { %v1512_v32 = vmax.f32 %v1394_v21, 0.0 }
 0x35a   : > { %v1504_v23 = vpop.f32.mrb[16].mxu0 }
 0x35b   : > { %v1505_v24 = vadd.f32 %v1730_v22, %v1504_v23  ;;  %v1983_v25 = vpop.f32.mrb[17].mxu0 }
 0x35c   : > { %v1507_v26 = vpop.f32.mrb[18].mxu0 }
 0x35d   : > { %v1513_v28 = vmax.f32 %v1505_v24, 0.0  ;;  %v1508_v29 = vadd.f32 %v1730_v22, %v1507_v26  ;;  %v1984_v30 = vpop.f32.mrb[19].mxu0 }
 0x35f   : > { %v1515_v31 = vadd.f32 %v1513_v28, %v1511_v27  ;;  %v1514_v33 = vmax.f32 %v1508_v29, 0.0 }
 0x361   : > { %1517 = vst [vmem:[%s254_s20] sm:$0xff] %v1515_v31  ;;  %v1516_v34 = vadd.f32 %v1514_v33, %v1512_v32 }
 0x363   : > { %1518 = vst [vmem:[%s254_s20 + $0x8] sm:$0xff] %v1516_v34 }
 0x364 PF: > { %s17_s18 = sadd.s32 1, %s2185_s18  }
 0x365   : > { %p14_p9 = scmp.ge.s32.totalorder %s17_s18, 4  }
 0x367   :  { %16 = sbr.rel (!%p14_p9) target bundleno = 2 (0x2), region = 87 }
 0x36e   :  { %1540 = vsyncpa [#allocation3], 1 }
 0x36f   :  { %1542 = vsyncpa [#allocation3 + $0x1], 1 }
 0x370   :  { %1543 = vsyncpa [#allocation5], 1 }

</bundles_post_ra>
